<compile_context>
chip_gen: v6e
topology: v6e:2x2x1
jax: 0.10.0
libtpu: 0.0.40
codegen_flags: <defaults>
</compile_context>

<pallas_src>
import functools

import jax
import jax.numpy as jnp
from jax.experimental import pallas as pl
from jax.experimental.pallas import tpu as pltpu


_VMEM_LIMIT_BYTES = 48 << 20   # < v7x 64 MiB physical; > v5e 16 MiB default scope
_TB_CAP = 2048                 # batch-tile cap (bounds (TB,1) acc/out vreg traffic)
_TF_CAP = 4096                 # feature-tile cap, multiple of 128 (lane granule)

_CORE_PARALLEL_OK = True       # flipped off if the backend rejects CORE_PARALLEL


def _round_up(x, m):
    return pl.cdiv(x, m) * m


def _x_tile_budget_bytes():
    """Per-step x-tile byte budget, TPU-generation aware."""
    try:
        vmem_cap = pltpu.get_tpu_info().vmem_capacity_bytes
    except Exception:
        vmem_cap = 128 << 20
    # v7x (64 MiB VMEM, 3.2 TB/s HBM): use bigger steps so the ~0.35us fixed
    # per-grid-step overhead is amortized (2 x 16 MiB double-buffer fits fine).
    # v5e/v6e (128 MiB VMEM): 8 MiB steps are already <10% overhead.
    return (16 << 20) if vmem_cap <= (64 << 20) else (8 << 20)


def _pick_tiles(B, F, feat_tile_cap, batch_tile_cap):
    budget_elems = _x_tile_budget_bytes() // 4           # f32 elements per x tile
    TF = F if F <= feat_tile_cap else feat_tile_cap      # full dim or 128-granule
    tb_budget = max(8, (budget_elems // max(TF, 1)) // 8 * 8)
    TB = max(8, min(batch_tile_cap, tb_budget, _round_up(B, 8)))
    return TB, TF


def _stable_sigmoid(z):
    # 1/(1+exp(-z)) without the inf intermediate for very negative z.
    e = jnp.exp(-jnp.abs(z))
    return jnp.where(z >= 0, 1.0 / (1.0 + e), e / (1.0 + e))


def _lr_kernel_single(b_ref, x_ref, w_ref, o_ref):
    # Fast path: whole feature dim in one tile -> no scratch, no branches.
    x = x_ref[...].astype(jnp.float32)
    w = w_ref[...].astype(jnp.float32)            # (1, F) broadcasts over TB rows
    z = jnp.sum(x * w, axis=-1, keepdims=True) + b_ref[0]
    o_ref[...] = _stable_sigmoid(z).astype(o_ref.dtype)


def _lr_kernel_multi(b_ref, x_ref, w_ref, o_ref, acc_ref, *,
                     n_feat, feat_tile, ragged_f):
    k = pl.program_id(1)

    @pl.when(k == 0)
    def _():
        acc_ref[...] = jnp.zeros_like(acc_ref)

    x = x_ref[...].astype(jnp.float32)
    w = w_ref[...].astype(jnp.float32)
    prod = x * w
    if ragged_f:
        # Mask the out-of-range feature tail of the last block: the padded
        # region of an edge block holds unspecified (possibly non-finite) data.
        lane = jax.lax.broadcasted_iota(jnp.int32, prod.shape, 1)
        prod = jnp.where(lane < (n_feat - k * feat_tile), prod, 0.0)
    acc_ref[...] += jnp.sum(prod, axis=-1, keepdims=True)

    @pl.when(k == pl.num_programs(1) - 1)
    def _():
        z = acc_ref[...] + b_ref[0]               # scalar bias from SMEM
        o_ref[...] = _stable_sigmoid(z).astype(o_ref.dtype)


def lr_forward(x, w, b, *, feat_tile_cap=_TF_CAP, batch_tile_cap=_TB_CAP):
    """Logistic regression forward: sigmoid(x @ w.T + b).

    x: (B, F) float32 (or bfloat16; widened in-kernel)
    w: (1, F) float32   (PyTorch nn.Linear(F, 1).weight layout)
    b: (1,)   float32   (PyTorch nn.Linear(F, 1).bias layout)
    returns (B, 1) float32
    """
    global _CORE_PARALLEL_OK
    B, F = x.shape
    assert w.shape == (1, F)
    assert b.shape == (1,)

    TB, TF = _pick_tiles(B, F, feat_tile_cap, batch_tile_cap)
    n_btiles = pl.cdiv(B, TB)
    n_ftiles = pl.cdiv(F, TF)
    out_shape = jax.ShapeDtypeStruct((B, 1), jnp.float32)

    if n_ftiles == 1:
        grid = (n_btiles,)
        kernel = _lr_kernel_single
        in_specs = [
            pl.BlockSpec(memory_space=pltpu.MemorySpace.SMEM),    # bias scalar
            pl.BlockSpec((TB, TF), lambda i: (i, 0)),             # x tile stream
            pl.BlockSpec((1, TF), lambda i: (0, 0)),              # resident weight
        ]
        out_specs = pl.BlockSpec((TB, 1), lambda i: (i, 0))
        scratch_shapes = []
        sem_tail = ()
    else:
        grid = (n_btiles, n_ftiles)                               # reduction axis last
        kernel = functools.partial(_lr_kernel_multi, n_feat=F, feat_tile=TF,
                                   ragged_f=(F % TF != 0))
        in_specs = [
            pl.BlockSpec(memory_space=pltpu.MemorySpace.SMEM),
            pl.BlockSpec((TB, TF), lambda i, k: (i, k)),
            pl.BlockSpec((1, TF), lambda i, k: (0, k)),
        ]
        out_specs = pl.BlockSpec((TB, 1), lambda i, k: (i, 0))
        scratch_shapes = [pltpu.VMEM((TB, 1), jnp.float32)]
        sem_tail = (pltpu.ARBITRARY,)

    def run(core_parallel):
        batch_sem = pltpu.CORE_PARALLEL if core_parallel else pltpu.PARALLEL
        return pl.pallas_call(
            kernel,
            out_shape=out_shape,
            grid_spec=pltpu.PrefetchScalarGridSpec(
                num_scalar_prefetch=0,
                grid=grid,
                in_specs=in_specs,
                out_specs=out_specs,
                scratch_shapes=scratch_shapes,
            ),
            compiler_params=pltpu.CompilerParams(
                dimension_semantics=(batch_sem,) + sem_tail,
                vmem_limit_bytes=_VMEM_LIMIT_BYTES,
            ),
        )(b, x, w)

    if _CORE_PARALLEL_OK:
        try:
            # Shard batch tiles across both TensorCores (v7x / megacore chips).
            return run(True)
        except Exception:
            _CORE_PARALLEL_OK = False             # single-TC chip / unsupported
    return run(False)


def _reference(x, w, b):
    return jax.nn.sigmoid(x @ w.T + b)


if __name__ == "__main__":
    key = jax.random.PRNGKey(0)
    k_x, k_w, k_b, k_x2 = jax.random.split(key, 4)

    # --- test 1: small shape matching the module's forward ------------------
    batch, n_features = 8, 32
    bound = 1.0 / jnp.sqrt(jnp.float32(n_features))
    x = jax.random.normal(k_x, (batch, n_features), dtype=jnp.float32)
    w = jax.random.uniform(k_w, (1, n_features), minval=-bound, maxval=bound,
                           dtype=jnp.float32)
    b = jax.random.uniform(k_b, (1,), minval=-bound, maxval=bound,
                           dtype=jnp.float32)

    out = lr_forward(x, w, b)
    jax.block_until_ready(out)
    assert out.shape == (batch, 1)
    assert jnp.allclose(out, _reference(x, w, b), atol=1e-5, rtol=1e-5)

    # --- test 2: ragged batch, single-feature-tile fast path (no padding copy)
    batch2, n_features2 = 37, 300
    x2 = jax.random.normal(k_x2, (batch2, n_features2), dtype=jnp.float32)
    w2 = jax.random.uniform(k_w, (1, n_features2), minval=-0.1, maxval=0.1,
                            dtype=jnp.float32)
    b2 = jax.random.uniform(k_b, (1,), minval=-0.1, maxval=0.1,
                            dtype=jnp.float32)

    out2 = lr_forward(x2, w2, b2)
    jax.block_until_ready(out2)
    assert out2.shape == (batch2, 1)
    assert jnp.allclose(out2, _reference(x2, w2, b2), atol=1e-5, rtol=1e-5)

    # --- test 3: force small tiles to exercise the multi-step reduction path,
    #             in-kernel ragged-feature masking, and ragged batch edge blocks
    out3 = lr_forward(x2, w2, b2, feat_tile_cap=128, batch_tile_cap=16)
    jax.block_until_ready(out3)
    assert out3.shape == (batch2, 1)
    assert jnp.allclose(out3, _reference(x2, w2, b2), atol=1e-5, rtol=1e-5)

    print("KERNEL_OK")
</pallas_src>

<mosaic_0001>
module attributes {stable_mosaic.version = 11 : i64} {
  func.func @_lr_kernel_single(%arg0: i32, %arg1: memref<1xf32, #tpu.memory_space<smem>>, %arg2: memref<8x32xf32, #tpu.memory_space<vmem>>, %arg3: memref<1x32xf32, #tpu.memory_space<vmem>>, %arg4: memref<8x1xf32, #tpu.memory_space<vmem>>) attributes {dimension_semantics = [#tpu.dimension_semantics<core_parallel>], iteration_bounds = array<i64: 1>, scalar_prefetch = 0 : i64, scratch_operands = 0 : i64, tpu.core_type = #tpu.core_type<tc>, window_params = [{transform_indices = @transform_0, window_bounds = array<i64: 1>}, {transform_indices = @transform_1, window_bounds = array<i64: 8, 32>}, {pipeline_mode = #tpu.pipeline_mode<synchronous>, transform_indices = @transform_2, window_bounds = array<i64: 1, 32>}, {transform_indices = @transform_3, window_bounds = array<i64: 8, 1>}]} {
    %c0 = arith.constant 0 : index
    %c0_0 = arith.constant 0 : index
    %0 = vector.load %arg2[%c0, %c0_0] : memref<8x32xf32, #tpu.memory_space<vmem>>, vector<8x32xf32>
    %c0_1 = arith.constant 0 : index
    %c0_2 = arith.constant 0 : index
    %1 = vector.load %arg3[%c0_1, %c0_2] : memref<1x32xf32, #tpu.memory_space<vmem>>, vector<1x32xf32>
    %2 = vector.broadcast %1 : vector<1x32xf32> to vector<8x32xf32>
    %3 = arith.mulf %0, %2 : vector<8x32xf32>
    %cst = arith.constant dense<0.000000e+00> : vector<8xf32>
    %4 = vector.multi_reduction <add>, %3, %cst [1] : vector<8x32xf32> to vector<8xf32>
    %5 = vector.shape_cast %4 : vector<8xf32> to vector<8x1xf32>
    %c0_3 = arith.constant 0 : index
    %6 = memref.load %arg1[%c0_3] : memref<1xf32, #tpu.memory_space<smem>>
    %7 = vector.broadcast %6 : f32 to vector<8x1xf32>
    %8 = arith.addf %5, %7 : vector<8x1xf32>
    %9 = math.absf %8 : vector<8x1xf32>
    %cst_4 = arith.constant 0.000000e+00 : f32
    %10 = vector.broadcast %cst_4 : f32 to vector<8x1xf32>
    %11 = arith.subf %10, %9 : vector<8x1xf32>
    %12 = math.exp %11 : vector<8x1xf32>
    %cst_5 = arith.constant 0.000000e+00 : f32
    %13 = vector.broadcast %cst_5 : f32 to vector<8x1xf32>
    %14 = arith.cmpf oge, %8, %13 : vector<8x1xf32>
    %cst_6 = arith.constant 1.000000e+00 : f32
    %15 = vector.broadcast %cst_6 : f32 to vector<8x1xf32>
    %16 = arith.addf %15, %12 : vector<8x1xf32>
    %cst_7 = arith.constant 1.000000e+00 : f32
    %17 = vector.broadcast %cst_7 : f32 to vector<8x1xf32>
    %18 = arith.divf %17, %16 : vector<8x1xf32>
    %cst_8 = arith.constant 1.000000e+00 : f32
    %19 = vector.broadcast %cst_8 : f32 to vector<8x1xf32>
    %20 = arith.addf %19, %12 : vector<8x1xf32>
    %21 = arith.divf %12, %20 : vector<8x1xf32>
    %22 = arith.select %14, %18, %21 : vector<8x1xi1>, vector<8x1xf32>
    %c0_9 = arith.constant 0 : index
    %c0_10 = arith.constant 0 : index
    %23 = vector.load %arg4[%c0_9, %c0_10] : memref<8x1xf32, #tpu.memory_space<vmem>>, vector<8x1xf32>
    tpu.vector_store %arg4[%c0_9, %c0_10], %22 {strides = array<i32>} : memref<8x1xf32, #tpu.memory_space<vmem>>, vector<8x1xf32>,
    return
  }
  func.func @transform_0(%arg0: i32) -> i32 {
    %c0_i32 = arith.constant 0 : i32
    %c0_i32_0 = arith.constant 0 : i32
    return %c0_i32 : i32
  }
  func.func @transform_1(%arg0: i32) -> (i32, i32) {
    %c0_i32 = arith.constant 0 : i32
    %c0_i32_0 = arith.constant 0 : i32
    return %arg0, %c0_i32 : i32, i32
  }
  func.func @transform_2(%arg0: i32) -> (i32, i32) {
    %c0_i32 = arith.constant 0 : i32
    %c0_i32_0 = arith.constant 0 : i32
    %c0_i32_1 = arith.constant 0 : i32
    return %c0_i32, %c0_i32_0 : i32, i32
  }
  func.func @transform_3(%arg0: i32) -> (i32, i32) {
    %c0_i32 = arith.constant 0 : i32
    %c0_i32_0 = arith.constant 0 : i32
    return %arg0, %c0_i32 : i32, i32
  }
}

module attributes {stable_mosaic.version = 11 : i64} {
  func.func @_lr_kernel_single(%arg0: i32, %arg1: memref<1xf32, #tpu.memory_space<smem>>, %arg2: memref<8x32xf32, #tpu.memory_space<vmem>>, %arg3: memref<1x32xf32, #tpu.memory_space<vmem>>, %arg4: memref<8x1xf32, #tpu.memory_space<vmem>>) attributes {dimension_semantics = [#tpu.dimension_semantics<parallel>], iteration_bounds = array<i64: 1>, scalar_prefetch = 0 : i64, scratch_operands = 0 : i64, tpu.core_type = #tpu.core_type<tc>, window_params = [{transform_indices = @transform_0, window_bounds = array<i64: 1>}, {transform_indices = @transform_1, window_bounds = array<i64: 8, 32>}, {pipeline_mode = #tpu.pipeline_mode<synchronous>, transform_indices = @transform_2, window_bounds = array<i64: 1, 32>}, {transform_indices = @transform_3, window_bounds = array<i64: 8, 1>}]} {
    %c0 = arith.constant 0 : index
    %c0_0 = arith.constant 0 : index
    %0 = vector.load %arg2[%c0, %c0_0] : memref<8x32xf32, #tpu.memory_space<vmem>>, vector<8x32xf32>
    %c0_1 = arith.constant 0 : index
    %c0_2 = arith.constant 0 : index
    %1 = vector.load %arg3[%c0_1, %c0_2] : memref<1x32xf32, #tpu.memory_space<vmem>>, vector<1x32xf32>
    %2 = vector.broadcast %1 : vector<1x32xf32> to vector<8x32xf32>
    %3 = arith.mulf %0, %2 : vector<8x32xf32>
    %cst = arith.constant dense<0.000000e+00> : vector<8xf32>
    %4 = vector.multi_reduction <add>, %3, %cst [1] : vector<8x32xf32> to vector<8xf32>
    %5 = vector.shape_cast %4 : vector<8xf32> to vector<8x1xf32>
    %c0_3 = arith.constant 0 : index
    %6 = memref.load %arg1[%c0_3] : memref<1xf32, #tpu.memory_space<smem>>
    %7 = vector.broadcast %6 : f32 to vector<8x1xf32>
    %8 = arith.addf %5, %7 : vector<8x1xf32>
    %9 = math.absf %8 : vector<8x1xf32>
    %cst_4 = arith.constant 0.000000e+00 : f32
    %10 = vector.broadcast %cst_4 : f32 to vector<8x1xf32>
    %11 = arith.subf %10, %9 : vector<8x1xf32>
    %12 = math.exp %11 : vector<8x1xf32>
    %cst_5 = arith.constant 0.000000e+00 : f32
    %13 = vector.broadcast %cst_5 : f32 to vector<8x1xf32>
    %14 = arith.cmpf oge, %8, %13 : vector<8x1xf32>
    %cst_6 = arith.constant 1.000000e+00 : f32
    %15 = vector.broadcast %cst_6 : f32 to vector<8x1xf32>
    %16 = arith.addf %15, %12 : vector<8x1xf32>
    %cst_7 = arith.constant 1.000000e+00 : f32
    %17 = vector.broadcast %cst_7 : f32 to vector<8x1xf32>
    %18 = arith.divf %17, %16 : vector<8x1xf32>
    %cst_8 = arith.constant 1.000000e+00 : f32
    %19 = vector.broadcast %cst_8 : f32 to vector<8x1xf32>
    %20 = arith.addf %19, %12 : vector<8x1xf32>
    %21 = arith.divf %12, %20 : vector<8x1xf32>
    %22 = arith.select %14, %18, %21 : vector<8x1xi1>, vector<8x1xf32>
    %c0_9 = arith.constant 0 : index
    %c0_10 = arith.constant 0 : index
    %23 = vector.load %arg4[%c0_9, %c0_10] : memref<8x1xf32, #tpu.memory_space<vmem>>, vector<8x1xf32>
    tpu.vector_store %arg4[%c0_9, %c0_10], %22 {strides = array<i32>} : memref<8x1xf32, #tpu.memory_space<vmem>>, vector<8x1xf32>,
    return
  }
  func.func @transform_0(%arg0: i32) -> i32 {
    %c0_i32 = arith.constant 0 : i32
    %c0_i32_0 = arith.constant 0 : i32
    return %c0_i32 : i32
  }
  func.func @transform_1(%arg0: i32) -> (i32, i32) {
    %c0_i32 = arith.constant 0 : i32
    %c0_i32_0 = arith.constant 0 : i32
    return %arg0, %c0_i32 : i32, i32
  }
  func.func @transform_2(%arg0: i32) -> (i32, i32) {
    %c0_i32 = arith.constant 0 : i32
    %c0_i32_0 = arith.constant 0 : i32
    %c0_i32_1 = arith.constant 0 : i32
    return %c0_i32, %c0_i32_0 : i32, i32
  }
  func.func @transform_3(%arg0: i32) -> (i32, i32) {
    %c0_i32 = arith.constant 0 : i32
    %c0_i32_0 = arith.constant 0 : i32
    return %arg0, %c0_i32 : i32, i32
  }
}

</mosaic_0001>

<bundles_post_ra>
// kernel: tpu_custom_call.1
= control target key start
LH: loop header
LB: loop body
LE: loop exit
PB: predicated region body
PF: predicated region fallthrough
CT: control target
= control target key end

     0   :  { %s4_s12 = sld [smem:[#allocation0]]   ;;  %s156_s0 = inlined_call_operand.<no memory space> [shape: f32[1], index: 0, kind: input, shape index: {}]   ;;  %s157_s1 = inlined_call_operand.hbm [shape: f32[8,32], index: 1, kind: input, shape index: {}]   ;;  %s158_s2 = inlined_call_operand.vmem [shape: f32[1,32], index: 2, kind: input, shape index: {}]   ;;  %s159_s3 = inlined_call_operand.vmem [shape: f32[8,1], index: 3, kind: output, shape index: {}]  }
   0x1   :  { %9 = vsyncpa [#allocation4], 0  ;;  %s120_s17 = smov [#allocation3]   ;;  %s98_s22 = scalar_lea.hbm %s157_s1, 128 }
   0x2   :  { %s20_s18 = sshll.u32 %s120_s17, 4  ;;  %s21_s18 = int_to_ptr.vmem [resolvable:$true] %s20_s18 }
   0x6   :  { %s88_s13 = sshll.u32 %s4_s12, 7 }
   0x7   :  { %s18_s16 = scalar_lea.hbm %s157_s1, %s88_s13 }
   0x8   :  { %s96_s19 = scalar_lea.hbm %s18_s16, 128 }
   0x9   :  { %p97_p0 = scmp.ne.s32.totalorder %s18_s16, %s96_s19  ;;  %p100_p1 = scmp.lt.s32.totalorder %s98_s22, %s96_s19 }
   0xb   :  { %p102_p2 = pnand %p100_p1, %p97_p0 }
   0xd   :  { %105 = shalt.err (!%p102_p2)
}
   0xe   :  { %s106_s23 = scalar_lea.vmem %s21_s18, 128  ;;  %p111_p4 = scmp.lt.s32.totalorder %s21_s18, %s21_s18 }
   0xf   :  { %p107_p3 = scmp.ne.s32.totalorder %s21_s18, %s106_s23  ;;  %p112_p5 = scmp.lt.s32.totalorder %s106_s23, %s106_s23 }
  0x11   :  { %p113_p6 = por %p112_p5, %p111_p4 }
  0x13   :  { %p114_p7 = pnand %p113_p6, %p107_p3 }
  0x15   :  { %117 = shalt.err (!%p114_p7)
}
  0x16   :  { %23 = dma.hbm_to_vmem [thread:$0]  %s18_s16, 128, %s21_s18, [#allocation4]  }
  0x17   :  { %118 = dma.done.wait [#allocation4], 128  }
  0x18   :  { %119 = vsyncadd [#allocation4], 4294967168  ;;  %v37_v0 = vld [vmem:[#allocation3] sm:$0xff]  ;;  %vm46_vm0 = vcmask 261120   ;;  %v51_v4 = vstv %s156_s0  ;;  %vm63_vm1 = vcmask 7168  }
  0x19   :  { %v90_v1 = vld [vmem:[%s158_s2] ss:$0 sm:$0xff] }
  0x1a   :  { %v45_v2 = vmul.f32 %v90_v1, %v37_v0 }
  0x1c   :  { %v47_v3 = vsel %vm46_vm0, %v45_v2, 0.0 }
  0x1d   :  { %48 = vadd.xlane.f32.xlu0 %v47_v3 }
  0xa6   :  { %v49_v5 = vpop.xlane.xlu0 %48 }
  0xa7   :  { %v52_v6 = vadd.f32 %v51_v4, %v49_v5 }
  0xa9   :  { %v53_v7 = vand.u32 2147483647, %v52_v6  ;;  %vm57_vm2 = vcmp.ge.f32.partialorder %v52_v6, 0.0 }
  0xab   :  { %v54_v8 = vsub.f32 0.0, %v53_v7 }
  0xad   :  { %v55_v9 = vmul.f32 1.442695, %v54_v8 }
  0xaf   :  { %92 = vpow2.f32 %v55_v9 }
  0xbc   :  { %v93_v10 = vpop.eup %92 }
  0xbd   :  { %v58_v11 = vadd.f32 1.0, %v93_v10 }
  0xbf   :  { %94 = vrcp.f32 %v58_v11 }
  0xcc   :  { %v95_v12 = vpop.eup %94 }
  0xcd   :  { %v61_v13 = vmul.f32 %v95_v12, %v93_v10 }
  0xcf   :  { %v62_v14 = vsel %vm57_vm2, %v95_v12, %v61_v13 }
  0xd0   :  { %64 = vst.msk [vmem:[%s159_s3] sm:$0xff] %vm63_vm1, %v62_v14 }
  0xd1   :  { %77 = vsyncpa [#allocation4], 1 }

// kernel: tpu_custom_call.1
= control target key start
LH: loop header
LB: loop body
LE: loop exit
PB: predicated region body
PF: predicated region fallthrough
CT: control target
= control target key end

     0   :  { %9 = vsyncpa [#allocation4], 0  ;;  %s88_s12 = smov [#allocation3]   ;;  %s121_s0 = inlined_call_operand.<no memory space> [shape: f32[1], index: 0, kind: input, shape index: {}]   ;;  %s122_s1 = inlined_call_operand.hbm [shape: f32[8,32], index: 1, kind: input, shape index: {}]   ;;  %s123_s2 = inlined_call_operand.vmem [shape: f32[1,32], index: 2, kind: input, shape index: {}]   ;;  %s124_s3 = inlined_call_operand.vmem [shape: f32[8,1], index: 3, kind: output, shape index: {}]  }
   0x1   :  { %s18_s13 = sshll.u32 %s88_s12, 4  ;;  %s19_s13 = int_to_ptr.vmem [resolvable:$true] %s18_s13 }
   0x2   :  { %s74_s14 = scalar_lea.vmem %s19_s13, 128  ;;  %p79_p1 = scmp.lt.s32.totalorder %s19_s13, %s19_s13 }
   0x3   :  { %p75_p0 = scmp.ne.s32.totalorder %s19_s13, %s74_s14  ;;  %p80_p2 = scmp.lt.s32.totalorder %s74_s14, %s74_s14 }
   0x5   :  { %p81_p3 = por %p80_p2, %p79_p1 }
   0x7   :  { %p82_p4 = pnand %p81_p3, %p75_p0 }
   0x9   :  { %85 = shalt.err (!%p82_p4)
}
   0xa   :  { %21 = dma.hbm_to_vmem [thread:$0]  %s122_s1, 128, %s19_s13, [#allocation4]  }
   0xb   :  { %86 = dma.done.wait [#allocation4], 128  }
   0xc   :  { %87 = vsyncadd [#allocation4], 4294967168  ;;  %v27_v0 = vld [vmem:[#allocation3] sm:$0xff]  ;;  %vm36_vm0 = vcmask 261120   ;;  %v41_v4 = vstv %s121_s0  ;;  %vm53_vm1 = vcmask 7168  }
   0xd   :  { %v60_v1 = vld [vmem:[%s123_s2] ss:$0 sm:$0xff] }
   0xe   :  { %v35_v2 = vmul.f32 %v60_v1, %v27_v0 }
  0x10   :  { %v37_v3 = vsel %vm36_vm0, %v35_v2, 0.0 }
  0x11   :  { %38 = vadd.xlane.f32.xlu0 %v37_v3 }
  0x9a   :  { %v39_v5 = vpop.xlane.xlu0 %38 }
  0x9b   :  { %v42_v6 = vadd.f32 %v41_v4, %v39_v5 }
  0x9d   :  { %v43_v7 = vand.u32 2147483647, %v42_v6  ;;  %vm47_vm2 = vcmp.ge.f32.partialorder %v42_v6, 0.0 }
  0x9f   :  { %v44_v8 = vsub.f32 0.0, %v43_v7 }
  0xa1   :  { %v45_v9 = vmul.f32 1.442695, %v44_v8 }
  0xa3   :  { %62 = vpow2.f32 %v45_v9 }
  0xb0   :  { %v63_v10 = vpop.eup %62 }
  0xb1   :  { %v48_v11 = vadd.f32 1.0, %v63_v10 }
  0xb3   :  { %64 = vrcp.f32 %v48_v11 }
  0xc0   :  { %v65_v12 = vpop.eup %64 }
  0xc1   :  { %v51_v13 = vmul.f32 %v65_v12, %v63_v10 }
  0xc3   :  { %v52_v14 = vsel %vm47_vm2, %v65_v12, %v51_v13 }
  0xc4   :  { %54 = vst.msk [vmem:[%s124_s3] sm:$0xff] %vm53_vm1, %v52_v14 }
  0xc5   :  { %59 = vsyncpa [#allocation4], 1 }

</bundles_post_ra>
